<compile_context>
chip_gen: v6e
topology: v6e:2x2x1
jax: 0.10.0
libtpu: 0.0.40
codegen_flags: <defaults>
</compile_context>

<pallas_src>
import functools
import math

import jax
import jax.numpy as jnp
from jax import lax
from jax.experimental import pallas as pl
from jax.experimental.pallas import tpu as pltpu

_INV_SQRT2 = 1.0 / math.sqrt(2.0)


def _gelu_exact(x):
    # torch.nn.GELU() default: 0.5 * x * (1 + erf(x / sqrt(2)))
    return 0.5 * x * (1.0 + lax.erf(x * _INV_SQRT2))


# ---------------------------------------------------------------------------
# Kernels
# ---------------------------------------------------------------------------
def _mlp_resident_kernel(x_ref, w1_ref, b1_ref, w2_ref, b2_ref, o_ref, *,
                         mm_dtype):
    """Weights fully resident in VMEM; one M tile per grid step."""
    x = x_ref[...]
    if mm_dtype is not None:
        x = x.astype(mm_dtype)
    h = jnp.dot(x, w1_ref[...], preferred_element_type=jnp.float32)
    h = _gelu_exact(h + b1_ref[...])
    # dropout(p=0.0) -> identity.
    # TODO(synk): add pltpu.prng_* based dropout if drop_ratio > 0 is needed.
    out = jnp.dot(h.astype(w2_ref.dtype), w2_ref[...],
                  preferred_element_type=jnp.float32)
    o_ref[...] = (out + b2_ref[...]).astype(o_ref.dtype)


def _mlp_htiled_kernel(x_ref, w1_ref, b1_ref, w2_ref, b2_ref, o_ref,
                       *scratch, mm_dtype, acc_in_out):
    """H-tiled reduction path: grid = (M tiles, H tiles)."""
    j = pl.program_id(1)
    acc_ref = o_ref if acc_in_out else scratch[0]

    @pl.when(j == 0)
    def _init():
        acc_ref[...] = jnp.zeros_like(acc_ref)

    x = x_ref[...]
    if mm_dtype is not None:
        x = x.astype(mm_dtype)
    h = jnp.dot(x, w1_ref[...], preferred_element_type=jnp.float32)
    h = _gelu_exact(h + b1_ref[...])
    # dropout(p=0.0) -> identity.
    acc_ref[...] += jnp.dot(h.astype(w2_ref.dtype), w2_ref[...],
                            preferred_element_type=jnp.float32)

    @pl.when(j == pl.num_programs(1) - 1)
    def _finalize():
        if acc_in_out:                       # o_ref is the f32 accumulator
            o_ref[...] += b2_ref[...]
        else:
            o_ref[...] = (acc_ref[...] + b2_ref[...]).astype(o_ref.dtype)


# ---------------------------------------------------------------------------
# Wrapper
# ---------------------------------------------------------------------------
def _round_up(x, m):
    return ((x + m - 1) // m) * m


def _sublane(dtype):
    size = jnp.dtype(dtype).itemsize
    return 8 if size >= 4 else (16 if size == 2 else 32)


def _vmem_budget_bytes():
    cap = 64 * 1024 * 1024        # conservative default: v7x per-core VMEM
    try:
        info = pltpu.get_tpu_info()
        v = getattr(info, "vmem_capacity_bytes", None)
        if v:
            cap = int(v)
    except Exception:
        pass
    budget = min(cap - (8 << 20), int(0.875 * cap))
    return max(budget, int(0.5 * cap))


def mlp_pallas(x, w1, b1, w2, b2, *, tm=512, th=512, matmul_dtype=None,
               force_h_tiling=False):
    """Forward pass of Mlp.

    x: [..., D]; w1: [D, H] (fc1.weight.T); b1: [H];
    w2: [H, D] (fc2.weight.T); b2: [D].
    matmul_dtype: optional low-precision MXU operand dtype (e.g. jnp.bfloat16);
      accumulation, bias add and GELU stay f32.
    """
    orig_shape = x.shape
    D = orig_shape[-1]
    H = w1.shape[1]
    assert w1.shape == (D, H) and w2.shape == (H, D)
    assert b1.shape == (H,) and b2.shape == (D,)

    x2d = x.reshape(-1, D)
    M = x2d.shape[0]
    out_dtype = x.dtype

    if matmul_dtype is not None:
        w1 = w1.astype(matmul_dtype)
        w2 = w2.astype(matmul_dtype)
    # Bias / GELU math stays in f32 regardless of operand precision.
    b1_2d = b1.reshape(1, H).astype(jnp.float32)
    b2_2d = b2.reshape(1, D).astype(jnp.float32)

    x_item = jnp.dtype(x2d.dtype).itemsize
    w_item = jnp.dtype(w1.dtype).itemsize
    o_item = jnp.dtype(out_dtype).itemsize

    # ---- M tile: sublane-aligned; >= 2 tiles so v7x shards across its 2 TCs.
    sub = _sublane(x2d.dtype)
    tm_eff = max(sub, min(_round_up(tm, sub), _round_up(M, sub)))
    while pl.cdiv(M, tm_eff) < 2 and tm_eff > sub:
        tm_eff = max(sub, _round_up(tm_eff // 2, sub))

    budget = _vmem_budget_bytes()

    def est_resident(tm_):
        return (4 * D * H * w_item                    # w1 + w2, double-buffered
                + 4 * (H + D) * 4                     # biases (f32), double-buffered
                + 2 * tm_ * D * (x_item + o_item)     # x / out tiles, double-buffered
                + tm_ * H * (4 + w_item)              # fc1 intermediate (f32 + cast)
                + tm_ * D * 4)                        # fc2 f32 result pre-cast

    def est_htiled(tm_, th_):
        acc = 0 if jnp.dtype(out_dtype) == jnp.dtype(jnp.float32) else tm_ * D * 4
        return (2 * tm_ * D * x_item                  # x tiles
                + 2 * (D * th_ + th_ * D) * w_item    # w1 / w2 H-tiles
                + 2 * (th_ + D) * 4                   # biases
                + 2 * tm_ * D * o_item                # out tiles
                + acc                                 # f32 accumulator scratch
                + tm_ * th_ * (4 + w_item)            # fc1 intermediate
                + tm_ * D * 4)                        # fc2 partial product

    # ---- FAST PATH: keep both weight matrices resident in VMEM. -------------
    use_resident = not force_h_tiling
    tm_res = tm_eff
    if use_resident:
        while est_resident(tm_res) > budget and tm_res > max(sub, 64):
            tm_res = max(sub, _round_up(tm_res // 2, sub))
        use_resident = est_resident(tm_res) <= budget

    if use_resident:
        grid = (pl.cdiv(M, tm_res),)
        vmem_limit = int(min(budget, max(1.25 * est_resident(tm_res), 32 << 20)))
        out = pl.pallas_call(
            functools.partial(_mlp_resident_kernel, mm_dtype=matmul_dtype),
            out_shape=jax.ShapeDtypeStruct((M, D), out_dtype),
            grid_spec=pltpu.PrefetchScalarGridSpec(
                num_scalar_prefetch=0,
                grid=grid,
                in_specs=[
                    pl.BlockSpec((tm_res, D), lambda i: (i, 0)),  # x tile
                    pl.BlockSpec((D, H), lambda i: (0, 0)),       # w1 (resident)
                    pl.BlockSpec((1, H), lambda i: (0, 0)),       # b1 (resident)
                    pl.BlockSpec((H, D), lambda i: (0, 0)),       # w2 (resident)
                    pl.BlockSpec((1, D), lambda i: (0, 0)),       # b2 (resident)
                ],
                out_specs=pl.BlockSpec((tm_res, D), lambda i: (i, 0)),
            ),
            compiler_params=pltpu.CompilerParams(
                dimension_semantics=("parallel",),
                vmem_limit_bytes=vmem_limit,
            ),
        )(x2d, w1, b1_2d, w2, b2_2d)
        return out.reshape(orig_shape)

    # ---- FALLBACK: stream w1/w2 in H tiles (reduction axis last). -----------
    def pick_th(req):
        req = max(128, min(req, H))
        if H % req == 0 and req % 128 == 0:
            return req
        for step in (256, 128):            # prefer 256-aligned tiles (v6e/v7x MXU)
            cand = (req // step) * step
            while cand >= step:
                if H % cand == 0:
                    return cand
                cand -= step
        return H                            # no 128-multiple divides H

    th_eff = pick_th(th)
    tm_b = tm_eff
    while est_htiled(tm_b, th_eff) > budget and th_eff > 128:
        new_th = pick_th(th_eff // 2)
        if new_th >= th_eff:
            break
        th_eff = new_th
    while est_htiled(tm_b, th_eff) > budget and tm_b > max(sub, 64):
        tm_b = max(sub, _round_up(tm_b // 2, sub))

    acc_in_out = jnp.dtype(out_dtype) == jnp.dtype(jnp.float32)
    scratch_shapes = [] if acc_in_out else [pltpu.VMEM((tm_b, D), jnp.float32)]
    grid = (pl.cdiv(M, tm_b), H // th_eff)
    vmem_limit = int(min(budget, max(1.25 * est_htiled(tm_b, th_eff), 32 << 20)))

    out = pl.pallas_call(
        functools.partial(_mlp_htiled_kernel, mm_dtype=matmul_dtype,
                          acc_in_out=acc_in_out),
        out_shape=jax.ShapeDtypeStruct((M, D), out_dtype),
        grid_spec=pltpu.PrefetchScalarGridSpec(
            num_scalar_prefetch=0,
            grid=grid,
            in_specs=[
                pl.BlockSpec((tm_b, D), lambda i, j: (i, 0)),    # x tile (j-invariant)
                pl.BlockSpec((D, th_eff), lambda i, j: (0, j)),  # w1 H-tile
                pl.BlockSpec((1, th_eff), lambda i, j: (0, j)),  # b1 H-tile
                pl.BlockSpec((th_eff, D), lambda i, j: (j, 0)),  # w2 H-tile
                pl.BlockSpec((1, D), lambda i, j: (0, 0)),       # b2
            ],
            out_specs=pl.BlockSpec((tm_b, D), lambda i, j: (i, 0)),
            scratch_shapes=scratch_shapes,
        ),
        compiler_params=pltpu.CompilerParams(
            dimension_semantics=("parallel", "arbitrary"),
            vmem_limit_bytes=vmem_limit,
        ),
    )(x2d, w1, b1_2d, w2, b2_2d)
    return out.reshape(orig_shape)


def mlp_reference(x2d, w1, b1, w2, b2):
    h = x2d @ w1 + b1
    h = _gelu_exact(h)
    return h @ w2 + b2


if __name__ == "__main__":
    # Small shapes consistent with the module: hidden = 2 * in_dim.
    in_dim = 128
    hidden = in_dim * 2
    batch, seq = 2, 40           # M = 80 -> exercises ragged / multi-tile M

    key = jax.random.PRNGKey(0)
    kx, kw1, kb1, kw2, kb2 = jax.random.split(key, 5)

    # PyTorch-Linear-like init: U(-1/sqrt(fan_in), +1/sqrt(fan_in)).
    lim1 = 1.0 / math.sqrt(in_dim)
    lim2 = 1.0 / math.sqrt(hidden)
    w1 = jax.random.uniform(kw1, (in_dim, hidden), jnp.float32, -lim1, lim1)
    b1 = jax.random.uniform(kb1, (hidden,), jnp.float32, -lim1, lim1)
    w2 = jax.random.uniform(kw2, (hidden, in_dim), jnp.float32, -lim2, lim2)
    b2 = jax.random.uniform(kb2, (in_dim,), jnp.float32, -lim2, lim2)
    x = jax.random.normal(kx, (batch, seq, in_dim), jnp.float32)

    ref = mlp_reference(x.reshape(-1, in_dim), w1, b1, w2, b2).reshape(x.shape)

    # 1) Fast path: weights resident in VMEM, 1-D grid over M.
    out_res = mlp_pallas(x, w1, b1, w2, b2)
    jax.block_until_ready(out_res)
    assert jnp.allclose(out_res, ref, atol=2e-4, rtol=2e-4), "resident path mismatch"

    # 2) Fallback path: forced H-tiled reduction grid with small tiles so the
    #    demo exercises multi-step M (parallel, ragged tail) and H (reduction),
    #    with f32 accumulation directly into the resident output block.
    out_ht = mlp_pallas(x, w1, b1, w2, b2, tm=32, th=128, force_h_tiling=True)
    jax.block_until_ready(out_ht)
    assert jnp.allclose(out_ht, ref, atol=2e-4, rtol=2e-4), "h-tiled path mismatch"

    # 3) bf16 MXU operands with f32 accumulation (mixed-precision smoke test).
    out_bf16 = mlp_pallas(x, w1, b1, w2, b2, matmul_dtype=jnp.bfloat16)
    jax.block_until_ready(out_bf16)
    assert jnp.allclose(out_bf16, ref, atol=1e-1, rtol=1e-1), "bf16 path mismatch"

    print("KERNEL_OK")
</pallas_src>

<mosaic_0001>
module attributes {stable_mosaic.version = 11 : i64} {
  func.func @_mlp_resident_kernel(%arg0: i32, %arg1: memref<40x128xf32, #tpu.memory_space<vmem>>, %arg2: memref<128x256xf32, #tpu.memory_space<vmem>>, %arg3: memref<1x256xf32, #tpu.memory_space<vmem>>, %arg4: memref<256x128xf32, #tpu.memory_space<vmem>>, %arg5: memref<1x128xf32, #tpu.memory_space<vmem>>, %arg6: memref<40x128xf32, #tpu.memory_space<vmem>>) attributes {dimension_semantics = [#tpu.dimension_semantics<parallel>], iteration_bounds = array<i64: 2>, scalar_prefetch = 0 : i64, scratch_operands = 0 : i64, tpu.core_type = #tpu.core_type<tc>, window_params = [{transform_indices = @transform_0, window_bounds = array<i64: 40, 128>}, {pipeline_mode = #tpu.pipeline_mode<synchronous>, transform_indices = @transform_1, window_bounds = array<i64: 128, 256>}, {pipeline_mode = #tpu.pipeline_mode<synchronous>, transform_indices = @transform_2, window_bounds = array<i64: 1, 256>}, {pipeline_mode = #tpu.pipeline_mode<synchronous>, transform_indices = @transform_3, window_bounds = array<i64: 256, 128>}, {pipeline_mode = #tpu.pipeline_mode<synchronous>, transform_indices = @transform_4, window_bounds = array<i64: 1, 128>}, {transform_indices = @transform_5, window_bounds = array<i64: 40, 128>}]} {
    %c0 = arith.constant 0 : index
    %c0_0 = arith.constant 0 : index
    %0 = vector.load %arg1[%c0, %c0_0] : memref<40x128xf32, #tpu.memory_space<vmem>>, vector<40x128xf32>
    %c0_1 = arith.constant 0 : index
    %c0_2 = arith.constant 0 : index
    %1 = vector.load %arg2[%c0_1, %c0_2] : memref<128x256xf32, #tpu.memory_space<vmem>>, vector<128x256xf32>
    %cst = arith.constant dense<0.000000e+00> : vector<40x256xf32>
    %2 = tpu.matmul %0, %1, %cst {dimension_numbers = #tpu.dot_dimension_numbers<[1], [0], [0], [1], [0, 0, 1, 1], [], []>} : vector<40x128xf32>, vector<128x256xf32>, vector<40x256xf32> -> vector<40x256xf32>
    %c0_3 = arith.constant 0 : index
    %c0_4 = arith.constant 0 : index
    %3 = vector.load %arg3[%c0_3, %c0_4] : memref<1x256xf32, #tpu.memory_space<vmem>>, vector<1x256xf32>
    %4 = vector.broadcast %3 : vector<1x256xf32> to vector<40x256xf32>
    %5 = arith.addf %2, %4 : vector<40x256xf32>
    %cst_5 = arith.constant 5.000000e-01 : f32
    %6 = vector.broadcast %cst_5 : f32 to vector<40x256xf32>
    %7 = arith.mulf %6, %5 : vector<40x256xf32>
    %cst_6 = arith.constant 0.707106769 : f32
    %8 = vector.broadcast %cst_6 : f32 to vector<40x256xf32>
    %9 = arith.mulf %5, %8 : vector<40x256xf32>
    %10 = math.erf %9 : vector<40x256xf32>
    %cst_7 = arith.constant 1.000000e+00 : f32
    %11 = vector.broadcast %cst_7 : f32 to vector<40x256xf32>
    %12 = arith.addf %11, %10 : vector<40x256xf32>
    %13 = arith.mulf %7, %12 : vector<40x256xf32>
    %c0_8 = arith.constant 0 : index
    %c0_9 = arith.constant 0 : index
    %14 = vector.load %arg4[%c0_8, %c0_9] : memref<256x128xf32, #tpu.memory_space<vmem>>, vector<256x128xf32>
    %cst_10 = arith.constant dense<0.000000e+00> : vector<40x128xf32>
    %15 = tpu.matmul %13, %14, %cst_10 {dimension_numbers = #tpu.dot_dimension_numbers<[1], [0], [0], [1], [0, 0, 1, 1], [], []>} : vector<40x256xf32>, vector<256x128xf32>, vector<40x128xf32> -> vector<40x128xf32>
    %c0_11 = arith.constant 0 : index
    %c0_12 = arith.constant 0 : index
    %16 = vector.load %arg5[%c0_11, %c0_12] : memref<1x128xf32, #tpu.memory_space<vmem>>, vector<1x128xf32>
    %17 = vector.broadcast %16 : vector<1x128xf32> to vector<40x128xf32>
    %18 = arith.addf %15, %17 : vector<40x128xf32>
    %c0_13 = arith.constant 0 : index
    %c0_14 = arith.constant 0 : index
    %19 = vector.load %arg6[%c0_13, %c0_14] : memref<40x128xf32, #tpu.memory_space<vmem>>, vector<40x128xf32>
    tpu.vector_store %arg6[%c0_13, %c0_14], %18 {strides = array<i32>} : memref<40x128xf32, #tpu.memory_space<vmem>>, vector<40x128xf32>,
    return
  }
  func.func @transform_0(%arg0: i32) -> (i32, i32) {
    %c0_i32 = arith.constant 0 : i32
    %c0_i32_0 = arith.constant 0 : i32
    return %arg0, %c0_i32 : i32, i32
  }
  func.func @transform_1(%arg0: i32) -> (i32, i32) {
    %c0_i32 = arith.constant 0 : i32
    %c0_i32_0 = arith.constant 0 : i32
    %c0_i32_1 = arith.constant 0 : i32
    return %c0_i32, %c0_i32_0 : i32, i32
  }
  func.func @transform_2(%arg0: i32) -> (i32, i32) {
    %c0_i32 = arith.constant 0 : i32
    %c0_i32_0 = arith.constant 0 : i32
    %c0_i32_1 = arith.constant 0 : i32
    return %c0_i32, %c0_i32_0 : i32, i32
  }
  func.func @transform_3(%arg0: i32) -> (i32, i32) {
    %c0_i32 = arith.constant 0 : i32
    %c0_i32_0 = arith.constant 0 : i32
    %c0_i32_1 = arith.constant 0 : i32
    return %c0_i32, %c0_i32_0 : i32, i32
  }
  func.func @transform_4(%arg0: i32) -> (i32, i32) {
    %c0_i32 = arith.constant 0 : i32
    %c0_i32_0 = arith.constant 0 : i32
    %c0_i32_1 = arith.constant 0 : i32
    return %c0_i32, %c0_i32_0 : i32, i32
  }
  func.func @transform_5(%arg0: i32) -> (i32, i32) {
    %c0_i32 = arith.constant 0 : i32
    %c0_i32_0 = arith.constant 0 : i32
    return %arg0, %c0_i32 : i32, i32
  }
}

</mosaic_0001>

<bundles_post_ra>
// kernel: tpu_custom_call.1
= control target key start
LH: loop header
LB: loop body
LE: loop exit
PB: predicated region body
PF: predicated region fallthrough
CT: control target
= control target key end

     0   :  { %10 = vsyncpa [#allocation3], 0  ;;  %s1273_s0 = inlined_call_operand.hbm [shape: f32[80,128], index: 0, kind: input, shape index: {}]   ;;  %s1274_s1 = inlined_call_operand.hbm [shape: f32[128,256], index: 1, kind: input, shape index: {}]   ;;  %s1275_s2 = inlined_call_operand.vmem [shape: f32[1,256], index: 2, kind: input, shape index: {}]   ;;  %s1276_s3 = inlined_call_operand.hbm [shape: f32[256,128], index: 3, kind: input, shape index: {}]   ;;  %s1277_s4 = inlined_call_operand.vmem [shape: f32[1,128], index: 4, kind: input, shape index: {}]   ;;  %s1278_s5 = inlined_call_operand.hbm [shape: f32[80,128], index: 5, kind: output, shape index: {}]  }
   0x1   :  { %12 = vsyncpa [#allocation3 + $0x1], 0 }
   0x2   :  { %13 = vsyncpa [#allocation6], 0 }
   0x3   :  { %14 = vsyncpa [#allocation4], 0 }
   0x4   :  { %16 = vsyncpa [#allocation4 + $0x1], 0  ;;  %s1057_s18 = smov 0   ;;  %s1059_s19 = smov 0  }
   0x5   :  { %s1061_s20 = smov 0   ;;  %s1063_s21 = smov 0  }
   0x6 LB: > { %s1078_s22 = sadd.s32 4294967295, %s1014_s21   ;;  %s708_s23 = sadd.s32 4294967294, %s1014_s21   ;;  %s1014_s21 = sphi %s1063_s21, %s1302_s21   ;;  %s1010_s20 = sphi %s1061_s20, %s1301_s20   ;;  %s1006_s19 = sphi %s1059_s19, %s1300_s19   ;;  %s1002_s18 = sphi %s1057_s18, %s1299_s18  }
   0x7   : > { %p42_p0 = scmp.ne.s32.totalorder %s1006_s19, %s1002_s18  ;;  %p1279_p1 = scmp.eq.s32.totalorder %s1078_s22, 0 }
   0x8   : > { %p156_p3 = scmp.eq.s32.totalorder %s708_s23, 1  ;;  %p709_p5 = scmp.ge.s32.totalorder %s1014_s21, 1 }
   0x9   : > { %p1087_p4 = por %p1279_p1, %p42_p0  ;;  %p163_p7 = scmp.lt.s32.totalorder %s1014_s21, 3 }
   0xa   : > { %p1092_p6 = por %p156_p3, %p42_p0  ;;  %s1016_s27 = smov [#allocation5]  }
   0xb   : > { %s1284_s24 = scalar_select %p1087_p4, 1, 0 }
   0xc   : > { %s1285_s25 = scalar_select %p1092_p6, 1, 0 }
   0xd   : > { %p1097_p8 = pnand %p709_p5, %p163_p7  ;;  %s175_s28 = sshll.u32 %s1016_s27, 4  ;;  %s176_s28 = int_to_ptr.vmem [resolvable:$true] %s175_s28 }
   0xe   : > { %s1017_s30 = smov [#allocation7]   ;;  %s877_s7 = scalar_lea.vmem %s176_s28, 4096 }
   0xf   : > { %s1286_s26 = scalar_select %p1097_p8, 1, 0 }
  0x10   : > { %p784_p9 = pneg %p1097_p8  ;;  %s191_s6 = sshll.u32 %s1017_s30, 4  ;;  %s192_s6 = int_to_ptr.vmem [resolvable:$true] %s191_s6 }
  0x11   : > { %p878_p13 = scmp.ne.s32.totalorder %s176_s28, %s877_s7  ;;  %p885_p5 = scmp.lt.s32.totalorder %s176_s28, %s176_s28 }
  0x12   : > { %p1106_p11 = pnand %p784_p9, %p1279_p1  ;;  %p886_p7 = scmp.lt.s32.totalorder %s877_s7, %s877_s7 }
  0x14   : > { %p868_p12 = pneg %p1106_p11  ;;  %p887_p10 = por %p886_p7, %p885_p5 }
  0x16   : > { %p880_p0 = pnand %p878_p13, %p868_p12 }
  0x18   : > { %p881_p3 = pneg %p880_p0 }
  0x1a   : > { %p888_p9 = pnand %p887_p10, %p881_p3 }
  0x1c   : > { %891 = shalt.err (!%p888_p9)
}
  0x1d   : > { %s1018_s8 = smov 256   ;;  %s1019_s9 = smov 16  }
  0x1e   : > { %787 = dma.hbm_to_vmem [thread:$0]  (!%p1106_p11), %s1274_s1, 4096, %s176_s28, [#allocation6], %s1018_s8, %s1018_s8, %s1019_s9  }
  0x1f   : > { %s903_s12 = scalar_lea.vmem %s192_s6, 4096  ;;  %p911_p2 = scmp.lt.s32.totalorder %s192_s6, %s192_s6 }
  0x20   : > { %p904_p1 = scmp.ne.s32.totalorder %s192_s6, %s903_s12  ;;  %p912_p6 = scmp.lt.s32.totalorder %s903_s12, %s903_s12 }
  0x22   : > { %p906_p13 = pnand %p904_p1, %p868_p12  ;;  %p913_p5 = por %p912_p6, %p911_p2 }
  0x24   : > { %p907_p0 = pneg %p906_p13 }
  0x26   : > { %p914_p10 = pnand %p913_p5, %p907_p0 }
  0x28   : > { %917 = shalt.err (!%p914_p10)
}
  0x29   : > { %s1280_s13 = smov 128   ;;  %s1021_s14 = smov 8  }
  0x2a   : > { %790 = dma.hbm_to_vmem [thread:$0]  (!%p1106_p11), %s1276_s3, 4096, %s192_s6, [#allocation6], %s1280_s13, %s1280_s13, %s1021_s14  }
  0x2b   : > { %s1132_s17 = sadd.s32 1, %s1014_s21   ;;  %s29_s27 = sadd.s32 1, %s1010_s20 }
  0x2c   : > { %s26_s23 = ssub.s32 %s1014_s21, %s1132_s17  ;;  %p36_p2 = scmp.ne.s32.totalorder %s1010_s20, %s1006_s19 }
  0x2d   : > { %p27_p1 = scmp.eq.s32.totalorder %s26_s23, 0  ;;  %p37_p6 = scmp.eq.s32.totalorder %s1014_s21, 0 }
  0x2e   : > { %p1288_p3 = scmp.eq.s32.totalorder %s1078_s22, 1  ;;  %p801_p9 = scmp.lt.s32.totalorder %s1014_s21, 2 }
  0x2f   : > { %s1141_s28 = scalar_select %p27_p1, %s1010_s20, %s29_s27  }
  0x30   : > { %p38_p12 = por %p37_p6, %p36_p2  ;;  %p1145_p7 = por %p1288_p3, %p36_p2 }
  0x31   : > { %s208_s30 = sand.u32 1, %s1010_s20   ;;  %s721_s6 = smul.u32 640, %s1014_s21 }
  0x32   : > { %s1289_s29 = scalar_select %p1145_p7, 1, 0 }
  0x33   : > { %s770_s7 = smul.u32 40, %s208_s30  ;;  %p1152_p11 = pnand %p801_p9, %p38_p12 }
  0x34   : > { %s1159_s11 = scalar_lea.hbm %s1273_s0, %s721_s6  ;;  %s1163_s16 = scalar_lea.sflag [#allocation3], %s208_s30 }
  0x35   : > { %s212_s12 = scalar_lea.vmem [#allocation2], %s770_s7  ;;  %s918_s23 = scalar_lea.hbm %s1159_s11, 640 }
  0x36   : > { %s219_s15 = sshll.u32 %s212_s12, 4  ;;  %p919_p13 = scmp.ne.s32.totalorder %s1159_s11, %s918_s23  ;;  %s1161_s15 = int_to_ptr.vmem [resolvable:$true] %s219_s15 }
  0x37   : > { %p920_p0 = pneg %p1152_p11  ;;  %s923_s6 = scalar_lea.hbm %s1273_s0, 1280 }
  0x38   : > { %p924_p1 = scmp.lt.s32.totalorder %s1159_s11, %s1273_s0  ;;  %p925_p2 = scmp.lt.s32.totalorder %s923_s6, %s918_s23 }
  0x39   : > { %p921_p5 = pnand %p920_p0, %p919_p13 }
  0x3a   : > { %p926_p6 = por %p925_p2, %p924_p1 }
  0x3b   : > { %p922_p10 = pneg %p921_p5 }
  0x3d   : > { %p927_p12 = pnand %p926_p6, %p922_p10 }
  0x3f   : > { %930 = shalt.err (!%p927_p12)
}
  0x40   : > { %s931_s30 = scalar_lea.vmem %s1161_s15, 640  ;;  %s1022_s7 = smov [#allocation2]  }
  0x41   : > { %p932_p3 = scmp.ne.s32.totalorder %s1161_s15, %s931_s30  ;;  %s936_s12 = sshll.u32 %s1022_s7, 4  ;;  %s937_s12 = int_to_ptr.vmem [resolvable:$false] %s936_s12 }
  0x42   : > { %s938_s27 = scalar_lea.vmem %s937_s12, 1280  ;;  %p939_p5 = scmp.lt.s32.totalorder %s1161_s15, %s937_s12 }
  0x43   : > { %p934_p9 = pnand %p932_p3, %p920_p0  ;;  %p940_p7 = scmp.lt.s32.totalorder %s938_s27, %s931_s30 }
  0x45   : > { %p935_p13 = pneg %p934_p9  ;;  %p941_p4 = por %p940_p7, %p939_p5 }
  0x47   : > { %p942_p8 = pnand %p941_p4, %p935_p13 }
  0x49   : > { %945 = shalt.err (!%p942_p8)
}
  0x4a   : > { %s1291_s13 = smov 128   ;;  %p1292_p0 = scmp.ne.s32.totalorder %s1286_s26, 0 }
  0x4b   : > { %794 = dma.hbm_to_vmem [thread:$0]  (!%p1152_p11), %s1159_s11, 640, %s1161_s15, %s1163_s16, %s1291_s13, %s1291_s13, %s1021_s14  }
  0x4c   : > { %231 = sbr.rel (%p1292_p0) target bundleno = 565 (0x235), region = 40  ;;  %s1190_s23 = sand.u32 (!%p1292_p0), 1, %s1006_s19  }
  0x4d   : > { %s771_s9 = smul.u32 (!%p1292_p0), 40, %s1190_s23  ;;  %s234_s6 = scalar_lea.sflag (!%p1292_p0), [#allocation3], %s1190_s23 }
  0x4e   : > { %p1293_p4 = scmp.ne.s32.totalorder (!%p1292_p0), %s1284_s24, 0 }
  0x4f   : > { %s1196_s8 = scalar_lea.vmem (!%p1292_p0), [#allocation2], %s771_s9 }
  0x51   : > { %989 = dma.done.wait (%p1293_p4), %s234_s6, 640  }
  0x52   : > { %991 = vsyncadd (%p1293_p4), %s234_s6, 4294966656  ;;  %p1294_p8 = scmp.eq.s32.totalorder %s1078_s22, 0 }
  0x54   : > { %993 = dma.done.wait (%p1294_p8), [#allocation6], 8192   ;;  %p1295_p7 = pmov %p1294_p8 }
  0x55   : > { %v1023_v0 = vmov 0.0   ;;  %v310_v1 = vld [vmem:[#allocation5 + $0xf8] sm:$0xff]  ;;  %v309_v2 = vld [vmem:[#allocation5 + $0xf0] sm:$0xff]  ;;  %v308_v3 = vld [vmem:[#allocation5 + $0xe8] sm:$0xff]  ;;  %s271_s15 = scalar_lea.vmem [#allocation8], %s771_s9  ;;  %s722_s10 = smul.u32 640, %s1078_s22 }
  0x56   : > { %995 = vsyncadd (%p1295_p7), [#allocation6], 4294959104  ;;  %387 = vmatprep.mubr.f32.mxu0 %v1023_v0  ;;  %323 = vmatprep.subr.mxu0 %v310_v1  ;;  %v307_v4 = vld [vmem:[#allocation5 + $0xe0] sm:$0xff]  ;;  %v306_v5 = vld [vmem:[#allocation5 + $0xd8] sm:$0xff]  ;;  %s616_s16 = sshll.u32 %s271_s15, 4  ;;  %s603_s27 = scalar_lea.sflag [#allocation4], %s1190_s23  ;;  %s1225_s16 = int_to_ptr.vmem [resolvable:$true] %s616_s16 }
  0x57   : > { %324 = vmatpush1.msra.mxu0 %v309_v2  ;;  %v305_v6 = vld [vmem:[#allocation5 + $0xd0] sm:$0xff]  ;;  %v304_v7 = vld [vmem:[#allocation5 + $0xc8] sm:$0xff]  ;;  %v303_v8 = vld [vmem:[#allocation5 + $0xc0] sm:$0xff]  ;;  %s1230_s12 = scalar_lea.hbm %s1278_s5, %s722_s10  ;;  %s946_s13 = scalar_lea.vmem %s1225_s16, 640 }
  0x58   : > { %325 = vmatprep.subr.mxu0 %v308_v3  ;;  %v302_v9 = vld [vmem:[#allocation5 + $0xb8] sm:$0xff]  ;;  %v301_v10 = vld [vmem:[#allocation5 + $0xb0] sm:$0xff]  ;;  %v300_v11 = vld [vmem:[#allocation5 + $0xa8] sm:$0xff]  ;;  %p947_p11 = scmp.ne.s32.totalorder %s1225_s16, %s946_s13  ;;  %p1296_p10 = scmp.ne.s32.totalorder %s1289_s29, 0 }
  0x59   : > { %326 = vmatpush1.msra.mxu0 %v307_v4  ;;  %v299_v12 = vld [vmem:[#allocation5 + $0xa0] sm:$0xff]  ;;  %v298_v13 = vld [vmem:[#allocation5 + $0x98] sm:$0xff]  ;;  %v297_v14 = vld [vmem:[#allocation5 + $0x90] sm:$0xff]  ;;  %s1024_s22 = smov [#allocation8]  }
  0x5a   : > { %327 = vmatprep.subr.mxu0 %v306_v5  ;;  %v296_v15 = vld [vmem:[#allocation5 + $0x88] sm:$0xff]  ;;  %v499_v16 = vld [vmem:[#allocation7 + $0xf8] sm:$0xff]  ;;  %v295_v18 = vld [vmem:[#allocation5 + $0x80] sm:$0xff]  ;;  %p948_p1 = pnand %p947_p11, %p1296_p10  ;;  %s950_s9 = sshll.u32 %s1024_s22, 4  ;;  %s951_s9 = int_to_ptr.vmem [resolvable:$false] %s950_s9 }
  0x5b   : > { %328 = vmatpush1.msra.mxu0 %v305_v6  ;;  %v483_v17 = vld [vmem:[#allocation7 + $0x78] sm:$0xff]  ;;  %723 = vmatprep.subr.mxu1 %v499_v16  ;;  %v498_v19 = vld [vmem:[#allocation7 + $0xf0] sm:$0xff]  ;;  %v497_v22 = vld [vmem:[#allocation7 + $0xe8] sm:$0xff]  ;;  %v313_v6 = vlaneseq  ;;  %s952_s6 = scalar_lea.vmem %s951_s9, 1280  ;;  %p953_p6 = scmp.lt.s32.totalorder %s1225_s16, %s951_s9 }
  0x5c   : > { %329 = vmatprep.subr.mxu0 %v304_v7  ;;  %v482_v20 = vld [vmem:[#allocation7 + $0x70] sm:$0xff]  ;;  %v294_v21 = vld [vmem:[#allocation5 + $0x78] sm:$0xff]  ;;  %724 = vmatpush3.msra.mxu1 %v483_v17  ;;  %v481_v24 = vld [vmem:[#allocation7 + $0x68] sm:$0xff]  ;;  %p949_p2 = pneg %p948_p1  ;;  %p954_p12 = scmp.lt.s32.totalorder %s952_s6, %s946_s13 }
  0x5d   : > { %330 = vmatpush1.msra.mxu0 %v303_v8  ;;  %v293_v23 = vld [vmem:[#allocation5 + $0x70] sm:$0xff]  ;;  %725 = vmatprep.subr.mxu1 %v498_v19  ;;  %v292_v25 = vld [vmem:[#allocation5 + $0x68] sm:$0xff]  ;;  %v291_v26 = vld [vmem:[#allocation5 + $0x60] sm:$0xff]  ;;  %v314_v7 = vshrl.u32 %v313_v6, 7 }
  0x5e   : > { %331 = vmatprep.subr.mxu0 %v302_v9  ;;  %726 = vmatpush3.msra.mxu1 %v482_v20  ;;  %v290_v27 = vld [vmem:[#allocation5 + $0x58] sm:$0xff]  ;;  %v289_v28 = vld [vmem:[#allocation5 + $0x50] sm:$0xff]  ;;  %v288_v29 = vld [vmem:[#allocation5 + $0x48] sm:$0xff]  ;;  %p955_p3 = por %p954_p12, %p953_p6 }
  0x5f   : > { %332 = vmatpush1.msra.mxu0 %v301_v10  ;;  %727 = vmatprep.subr.mxu1 %v497_v22  ;;  %v287_v30 = vld [vmem:[#allocation5 + $0x40] sm:$0xff]  ;;  %v286_v31 = vld [vmem:[#allocation5 + $0x38] sm:$0xff]  ;;  %v285_v32 = vld [vmem:[#allocation5 + $0x30] sm:$0xff]  ;;  %v315_v8 = vsub.s32 0, %v314_v7  ;;  %v319_v10 = vsub.s32 1, %v314_v7 }
  0x60   : > { %333 = vmatprep.subr.mxu0 %v300_v11  ;;  %728 = vmatpush3.msra.mxu1 %v481_v24  ;;  %v284_v33 = vld [vmem:[#allocation5 + $0x28] sm:$0xff]  ;;  %v283_v34 = vld [vmem:[#allocation5 + $0x20] sm:$0xff]  ;;  %v282_v35 = vld [vmem:[#allocation5 + $0x18] sm:$0xff]  ;;  %p956_p9 = pnand %p955_p3, %p949_p2 }
  0x61   : > { %334 = vmatpush1.msra.mxu0 %v299_v12  ;;  %v281_v36 = vld [vmem:[#allocation5 + $0x10] sm:$0xff]  ;;  %v280_v37 = vld [vmem:[#allocation5 + $0x8] sm:$0xff]  ;;  %v279_v38 = vld [vmem:[#allocation5] sm:$0xff] }
  0x62   : > { %335 = vmatprep.subr.mxu0 %v298_v13  ;;  %v274_v39 = vld [vmem:[%s1196_s8] sm:$0xff]  ;;  %v275_v40 = vld [vmem:[%s1196_s8 + $0x8] sm:$0xff]  ;;  %v276_v41 = vld [vmem:[%s1196_s8 + $0x10] sm:$0xff] }
  0x63   : > { %336 = vmatpush1.msra.mxu0 %v297_v14  ;;  %v277_v42 = vld [vmem:[%s1196_s8 + $0x18] sm:$0xff]  ;;  %v278_v43 = vld [vmem:[%s1196_s8 + $0x20] sm:$0xff]  ;;  %v496_v44 = vld [vmem:[#allocation7 + $0xe0] sm:$0xff] }
  0x64   : > { %337 = vmatprep.subr.mxu0 %v296_v15  ;;  %729 = vmatprep.subr.mxu1 %v496_v44  ;;  %v480_v45 = vld [vmem:[#allocation7 + $0x60] sm:$0xff]  ;;  %v495_v46 = vld [vmem:[#allocation7 + $0xd8] sm:$0xff]  ;;  %v494_v48 = vld [vmem:[#allocation7 + $0xd0] sm:$0xff] }
  0x65   : > { %338 = vmatpush1.msra.mxu0 %v295_v18  ;;  %730 = vmatpush3.msra.mxu1 %v480_v45  ;;  %v479_v47 = vld [vmem:[#allocation7 + $0x58] sm:$0xff]  ;;  %v478_v49 = vld [vmem:[#allocation7 + $0x50] sm:$0xff]  ;;  %v493_v50 = vld [vmem:[#allocation7 + $0xc8] sm:$0xff] }
  0x66   : > { %339 = vmatprep.subr.mxu0 %v294_v21  ;;  %731 = vmatprep.subr.mxu1 %v495_v46  ;;  %v477_v51 = vld [vmem:[#allocation7 + $0x48] sm:$0xff]  ;;  %v492_v52 = vld [vmem:[#allocation7 + $0xc0] sm:$0xff]  ;;  %v491_v54 = vld [vmem:[#allocation7 + $0xb8] sm:$0xff] }
  0x67   : > { %340 = vmatpush1.msra.mxu0 %v293_v23  ;;  %732 = vmatpush3.msra.mxu1 %v479_v47  ;;  %v476_v53 = vld [vmem:[#allocation7 + $0x40] sm:$0xff]  ;;  %v475_v55 = vld [vmem:[#allocation7 + $0x38] sm:$0xff]  ;;  %v490_v56 = vld [vmem:[#allocation7 + $0xb0] sm:$0xff] }
  0x68   : > { %341 = vmatprep.subr.mxu0 %v292_v25  ;;  %733 = vmatprep.subr.mxu1 %v494_v48  ;;  %v474_v57 = vld [vmem:[#allocation7 + $0x30] sm:$0xff]  ;;  %v489_v58 = vld [vmem:[#allocation7 + $0xa8] sm:$0xff]  ;;  %v488_v60 = vld [vmem:[#allocation7 + $0xa0] sm:$0xff] }
  0x69   : > { %342 = vmatpush1.msra.mxu0 %v291_v26  ;;  %734 = vmatpush3.msra.mxu1 %v478_v49  ;;  %v473_v59 = vld [vmem:[#allocation7 + $0x28] sm:$0xff]  ;;  %v472_v61 = vld [vmem:[#allocation7 + $0x20] sm:$0xff]  ;;  %v487_v62 = vld [vmem:[#allocation7 + $0x98] sm:$0xff] }
  0x6a   : > { %343 = vmatprep.subr.mxu0 %v290_v27  ;;  %735 = vmatprep.subr.mxu1 %v493_v50  ;;  %v471_v63 = vld [vmem:[#allocation7 + $0x18] sm:$0xff]  ;;  %v470_v1 = vld [vmem:[#allocation7 + $0x10] sm:$0xff]  ;;  %v485_v2 = vld [vmem:[#allocation7 + $0x88] sm:$0xff] }
  0x6b   : > { %344 = vmatpush1.msra.mxu0 %v289_v28  ;;  %736 = vmatpush3.msra.mxu1 %v477_v51  ;;  %v469_v3 = vld [vmem:[#allocation7 + $0x8] sm:$0xff]  ;;  %v484_v4 = vld [vmem:[#allocation7 + $0x80] sm:$0xff]  ;;  %v311_v9 = vld [vmem:[%s1275_s2] sm:$0x3] }
  0x6c   : > { %345 = vmatprep.subr.mxu0 %v288_v29  ;;  %737 = vmatprep.subr.mxu1 %v492_v52  ;;  %v468_v5 = vld [vmem:[#allocation7] sm:$0xff]  ;;  %v316_v11 = vrot.slane %v311_v9, %v315_v8  ;;  %v320_v12 = vrot.slane %v311_v9, %v319_v10 }
  0x6d   : > { %346 = vmatpush1.msra.mxu0 %v287_v30  ;;  %738 = vmatpush3.msra.mxu1 %v476_v53 }
  0x6e   : > { %347 = vmatprep.subr.mxu0 %v286_v31  ;;  %739 = vmatprep.subr.mxu1 %v491_v54 }
  0x6f   : > { %348 = vmatpush1.msra.mxu0 %v285_v32  ;;  %740 = vmatpush3.msra.mxu1 %v475_v55 }
  0x70   : > { %349 = vmatprep.subr.mxu0 %v284_v33  ;;  %741 = vmatprep.subr.mxu1 %v490_v56 }
  0x71   : > { %350 = vmatpush1.msra.mxu0 %v283_v34  ;;  %742 = vmatpush3.msra.mxu1 %v474_v57 }
  0x72   : > { %351 = vmatprep.subr.mxu0 %v282_v35  ;;  %743 = vmatprep.subr.mxu1 %v489_v58 }
  0x73   : > { %352 = vmatpush1.msra.mxu0 %v281_v36  ;;  %744 = vmatpush3.msra.mxu1 %v473_v59 }
  0x74   : > { %353 = vmatprep.subr.mxu0 %v280_v37  ;;  %745 = vmatprep.subr.mxu1 %v488_v60 }
  0x75   : > { %354 = vmatpush1.msra.mxu0 %v279_v38  ;;  %746 = vmatpush3.msra.mxu1 %v472_v61 }
  0x76   : > { %388 = vmatmul.mubr.f32.vlgmr.msra.gmra.mxu0 %v274_v39  ;;  %747 = vmatprep.subr.mxu1 %v487_v62 }
  0x77   : > { %393 = vmatprep.mubr.f32.mxu0 %v1023_v0  ;;  %748 = vmatpush3.msra.mxu1 %v471_v63 }
  0x7a   : > { %394 = vmatmul.mubr.f32.gmra.mxu0 %v275_v40 }
  0x7b   : > { %399 = vmatprep.mubr.f32.mxu0 %v1023_v0 }
  0x7e   : > { %400 = vmatmul.mubr.f32.gmra.mxu0 %v276_v41 }
  0x7f   : > { %405 = vmatprep.mubr.f32.mxu0 %v1023_v0 }
  0x82   : > { %406 = vmatmul.mubr.f32.gmra.mxu0 %v277_v42 }
  0x83   : > { %411 = vmatprep.mubr.f32.mxu0 %v1023_v0  ;;  %v486_v0 = vld [vmem:[#allocation7 + $0x90] sm:$0xff] }
  0x84   : > { %749 = vmatprep.subr.mxu1 %v486_v0 }
  0x85   : > { %750 = vmatpush3.msra.mxu1 %v470_v1 }
  0x86   : > { %412 = vmatmul.mubr.f32.gmra.mxu0 %v278_v43  ;;  %751 = vmatprep.subr.mxu1 %v485_v2 }
  0x87   : > { %752 = vmatpush3.msra.mxu1 %v469_v3 }
  0x88   : > { %753 = vmatprep.subr.mxu1 %v484_v4 }
  0x89   : > { %754 = vmatpush3.msra.mxu1 %v468_v5 }
 0x136   : > { %v389_v13 = vpop.f32.mrf.mxu0 }
 0x137   : > { %v390_v14 = vadd.f32 %v389_v13, %v316_v11 }
 0x138   : > { %v391_v15 = vpop.f32.mrf.mxu0 }
 0x139   : > { %v428_v16 = vmul.f32 0.70710677, %v390_v14  ;;  %v392_v17 = vadd.f32 %v391_v15, %v320_v12  ;;  %v418_v49 = vmul.f32 0.5, %v390_v14 }
 0x13a   : > { %v395_v18 = vpop.f32.mrf.mxu0 }
 0x13b   : > { %846 = verf.f32 %v428_v16  ;;  %v429_v19 = vmul.f32 0.70710677, %v392_v17  ;;  %v396_v20 = vadd.f32 %v395_v18, %v316_v11  ;;  %v419_v46 = vmul.f32 0.5, %v392_v17 }
 0x13c   : > { %v397_v21 = vpop.f32.mrf.mxu0 }
 0x13d   : > { %848 = verf.f32 %v429_v19  ;;  %v430_v22 = vmul.f32 0.70710677, %v396_v20  ;;  %v398_v23 = vadd.f32 %v397_v21, %v320_v12  ;;  %v420_v57 = vmul.f32 0.5, %v396_v20  ;;  %v717_v20 = vld [vmem:[%s1277_s4] ss:$0 sm:$0xff] }
 0x13e   : > { %v401_v24 = vpop.f32.mrf.mxu0 }
 0x13f   : > { %850 = verf.f32 %v430_v22  ;;  %v431_v25 = vmul.f32 0.70710677, %v398_v23  ;;  %v402_v26 = vadd.f32 %v401_v24, %v316_v11  ;;  %v421_v54 = vmul.f32 0.5, %v398_v23 }
 0x140   : > { %v403_v27 = vpop.f32.mrf.mxu0 }
 0x141   : > { %852 = verf.f32 %v431_v25  ;;  %v432_v28 = vmul.f32 0.70710677, %v402_v26  ;;  %v404_v29 = vadd.f32 %v403_v27, %v320_v12  ;;  %v422_v1 = vmul.f32 0.5, %v402_v26 }
 0x142   : > { %v407_v30 = vpop.f32.mrf.mxu0 }
 0x143   : > { %854 = verf.f32 %v432_v28  ;;  %v433_v31 = vmul.f32 0.70710677, %v404_v29  ;;  %v408_v32 = vadd.f32 %v407_v30, %v316_v11  ;;  %v423_v62 = vmul.f32 0.5, %v404_v29 }
 0x144   : > { %v409_v33 = vpop.f32.mrf.mxu0 }
 0x145   : > { %856 = verf.f32 %v433_v31  ;;  %v434_v34 = vmul.f32 0.70710677, %v408_v32  ;;  %v410_v35 = vadd.f32 %v409_v33, %v320_v12  ;;  %v424_v9 = vmul.f32 0.5, %v408_v32 }
 0x146   : > { %v413_v36 = vpop.f32.mrf.mxu0 }
 0x147   : > { %858 = verf.f32 %v434_v34  ;;  %v435_v37 = vmul.f32 0.70710677, %v410_v35  ;;  %v414_v38 = vadd.f32 %v413_v36, %v316_v11  ;;  %v425_v6 = vmul.f32 0.5, %v410_v35 }
 0x148   : > { %v847_v39 = vpop.eup %846  ;;  %v415_v40 = vpop.f32.mrf.mxu0 }
 0x149   : > { %860 = verf.f32 %v435_v37  ;;  %v436_v41 = vmul.f32 0.70710677, %v414_v38  ;;  %v416_v42 = vadd.f32 %v415_v40, %v320_v12  ;;  %v448_v44 = vadd.f32 1.0, %v847_v39 }
 0x14a   : > { %v849_v43 = vpop.eup %848  ;;  %v426_v16 = vmul.f32 0.5, %v414_v38 }
 0x14b   : > { %862 = verf.f32 %v436_v41  ;;  %v437_v45 = vmul.f32 0.70710677, %v416_v42  ;;  %v449_v47 = vadd.f32 1.0, %v849_v43  ;;  %v458_v52 = vmul.f32 %v448_v44, %v418_v49 }
 0x14c   : > { %v851_v48 = vpop.eup %850  ;;  %v427_v14 = vmul.f32 0.5, %v416_v42 }
 0x14d   : > { %864 = verf.f32 %v437_v45  ;;  %v459_v50 = vmul.f32 %v449_v47, %v419_v46  ;;  %v450_v53 = vadd.f32 1.0, %v851_v48 }
 0x14e   : > { %v853_v51 = vpop.eup %852 }
 0x14f   : > { %571 = vmatprep.mubr.f32.mxu1 %v459_v50  ;;  %v451_v55 = vadd.f32 1.0, %v853_v51  ;;  %v460_v60 = vmul.f32 %v450_v53, %v420_v57 }
 0x150   : > { %v855_v56 = vpop.eup %854  ;;  %572 = vmatmul.mubr.f32.vlgmr.msra.gmra.mxu1 %v458_v52 }
 0x151   : > { %v461_v58 = vmul.f32 %v451_v55, %v421_v54  ;;  %v452_v61 = vadd.f32 1.0, %v855_v56 }
 0x152   : > { %v857_v59 = vpop.eup %856 }
 0x153   : > { %576 = vmatprep.mubr.f32.mxu1 %v461_v58  ;;  %v453_v63 = vadd.f32 1.0, %v857_v59  ;;  %v462_v4 = vmul.f32 %v452_v61, %v422_v1 }
 0x154   : > { %v859_v0 = vpop.eup %858  ;;  %577 = vmatmul.mubr.f32.gmra.mxu1 %v460_v60 }
 0x155   : > { %v463_v2 = vmul.f32 %v453_v63, %v423_v62  ;;  %v454_v5 = vadd.f32 1.0, %v859_v0 }
 0x156   : > { %v861_v3 = vpop.eup %860 }
 0x157   : > { %581 = vmatprep.mubr.f32.mxu1 %v463_v2  ;;  %v455_v7 = vadd.f32 1.0, %v861_v3  ;;  %v464_v12 = vmul.f32 %v454_v5, %v424_v9 }
 0x158   : > { %v863_v8 = vpop.eup %862  ;;  %582 = vmatmul.mubr.f32.gmra.mxu1 %v462_v4 }
 0x159   : > { %v465_v10 = vmul.f32 %v455_v7, %v425_v6  ;;  %v456_v13 = vadd.f32 1.0, %v863_v8 }
 0x15a   : > { %v865_v11 = vpop.eup %864 }
 0x15b   : > { %586 = vmatprep.mubr.f32.mxu1 %v465_v10  ;;  %v457_v15 = vadd.f32 1.0, %v865_v11  ;;  %v466_v18 = vmul.f32 %v456_v13, %v426_v16 }
 0x15c   : > { %587 = vmatmul.mubr.f32.gmra.mxu1 %v464_v12 }
 0x15d   : > { %v467_v17 = vmul.f32 %v457_v15, %v427_v14 }
 0x15f   : > { %591 = vmatprep.mubr.f32.mxu1 %v467_v17 }
 0x160   : > { %592 = vmatmul.mubr.f32.gmra.mxu1 %v466_v18 }
 0x210   : > { %v755_v19 = vpop.f32.mrf.mxu1 }
 0x212   : > { %v756_v21 = vpop.f32.mrf.mxu1 }
 0x213   : > { %v757_v22 = vadd.f32 %v756_v21, %v755_v19 }
 0x214   : > { %v758_v23 = vpop.f32.mrf.mxu1 }
 0x215   : > { %v574_v24 = vadd.f32 %v757_v22, %v717_v20 }
 0x216   : > { %v759_v25 = vpop.f32.mrf.mxu1 }
 0x217   : > { %597 = vst [vmem:[%s271_s15] sm:$0xff] %v574_v24  ;;  %v760_v26 = vadd.f32 %v759_v25, %v758_v23 }
 0x218   : > { %v761_v27 = vpop.f32.mrf.mxu1 }
 0x219   : > { %v579_v28 = vadd.f32 %v760_v26, %v717_v20 }
 0x21a   : > { %v762_v29 = vpop.f32.mrf.mxu1 }
 0x21b   : > { %598 = vst [vmem:[%s271_s15 + $0x8] sm:$0xff] %v579_v28  ;;  %v763_v30 = vadd.f32 %v762_v29, %v761_v27 }
 0x21c   : > { %v764_v31 = vpop.f32.mrf.mxu1 }
 0x21d   : > { %v584_v32 = vadd.f32 %v763_v30, %v717_v20 }
 0x21e   : > { %v765_v33 = vpop.f32.mrf.mxu1 }
 0x21f   : > { %599 = vst [vmem:[%s271_s15 + $0x10] sm:$0xff] %v584_v32  ;;  %v766_v34 = vadd.f32 %v765_v33, %v764_v31 }
 0x220   : > { %v767_v35 = vpop.f32.mrf.mxu1 }
 0x221   : > { %v589_v36 = vadd.f32 %v766_v34, %v717_v20 }
 0x222   : > { %v768_v37 = vpop.f32.mrf.mxu1 }
 0x223   : > { %600 = vst [vmem:[%s271_s15 + $0x18] sm:$0xff] %v589_v36  ;;  %v769_v38 = vadd.f32 %v768_v37, %v767_v35 }
 0x225   : > { %v594_v39 = vadd.f32 %v769_v38, %v717_v20 }
 0x227   : > { %601 = vst [vmem:[%s271_s15 + $0x20] sm:$0xff] %v594_v39 }
 0x228   : > { %959 = shalt.err (!%p956_p9)
}
 0x229   : > { %s960_s8 = scalar_lea.hbm %s1230_s12, 640  ;;  %s964_s14 = scalar_lea.hbm %s1278_s5, 1280 }
 0x22a   : > { %p961_p13 = scmp.ne.s32.totalorder %s1230_s12, %s960_s8  ;;  %p965_p4 = scmp.lt.s32.totalorder %s1230_s12, %s1278_s5 }
 0x22b   : > { %p966_p8 = scmp.lt.s32.totalorder %s964_s14, %s960_s8 }
 0x22c   : > { %p962_p5 = pnand %p961_p13, %p1296_p10 }
 0x22d   : > { %p967_p7 = por %p966_p8, %p965_p4 }
 0x22e   : > { %p963_p0 = pneg %p962_p5 }
 0x230   : > { %p968_p11 = pnand %p967_p7, %p963_p0 }
 0x232   : > { %971 = shalt.err (!%p968_p11)
}
 0x233   : > { %s1025_s10 = smov 128   ;;  %s1026_s30 = smov 8  }
 0x234   : > { %782 = dma.vmem_to_hbm [thread:$0]  (%p1296_p10), %s1225_s16, 640, %s1230_s12, %s603_s27, %s1025_s10, %s1025_s10, %s1026_s30  }
 0x235 PF: > { %s631_s7 = sand.u32 1, %s1002_s18   ;;  %p1297_p1 = scmp.ne.s32.totalorder %s1285_s25, 0 }
 0x236   : > { %p1298_p2 = scmp.ge.s32.totalorder %s1014_s21, 2  ;;  %s632_s13 = scalar_lea.sflag [#allocation4], %s631_s7 }
 0x238   : > { %p796_p6 = pnand %p1298_p2, %p1297_p1 }
 0x23a   : > { %p797_p12 = pneg %p796_p6 }
 0x23c   : > { %997 = dma.done.wait (%p797_p12), %s632_s13, 640  }
 0x23d   : > { %999 = vsyncadd (%p797_p12), %s632_s13, 4294966656  ;;  %p19_p3 = scmp.ge.s32.totalorder %s1132_s17, 4   ;;  %s1299_s18 = smov %s1006_s19 }
 0x23e   : > { %s1300_s19 = smov %s1010_s20  ;;  %s1301_s20 = smov %s1141_s28 }
 0x23f   : > { %s1302_s21 = smov %s1132_s17  ;;  %21 = sbr.rel (!%p19_p3) target bundleno = 6 (0x6), region = 93 }
 0x244   :  { %637 = vsyncpa [#allocation3], 1 }
 0x245   :  { %639 = vsyncpa [#allocation3 + $0x1], 1 }
 0x246   :  { %640 = vsyncpa [#allocation6], 1 }
 0x247   :  { %641 = vsyncpa [#allocation4], 1 }
 0x248   :  { %643 = vsyncpa [#allocation4 + $0x1], 1 }

</bundles_post_ra>
